<compile_context>
chip_gen: v5e
topology: v5e:2x2
jax: 0.10.0
libtpu: 0.0.40
codegen_flags: <defaults>
</compile_context>

<pallas_src>
import functools

import numpy as np
import jax
import jax.numpy as jnp
from jax.experimental import pallas as pl
from jax.experimental.pallas import tpu as pltpu

_LANE = 128


def _min_sublane(dtype) -> int:
    """Minimum legal sublane tile for this dtype (f32->8, bf16->16, 8-bit->32)."""
    return {4: 8, 2: 16, 1: 32}.get(jnp.dtype(dtype).itemsize, 8)


def _wave_source_kernel(tile_r_ref, tile_c_ref,          # scalar prefetch (SMEM)
                        mask_ref, b_ref, bext_ref, bt_ref,  # inputs
                        out_ref):                            # output (aliases B)
    del tile_r_ref, tile_c_ref  # only used by the index_maps
    src = (bext_ref[...] + bt_ref[0]).astype(out_ref.dtype)
    out_ref[...] = jnp.where(mask_ref[...] != 0.0, src, b_ref[...])


def wave_source_forward(B, B_ext_0, Bt, x, y, dim=0, *,
                        row_block=None, col_block=None):
    """Pallas equivalent of WaveSource(x, y, dim).forward(B, B_ext_0, Bt).

    B, B_ext_0 : (C, H, W) arrays
    Bt         : scalar (time-varying source amplitude)
    x, y, dim  : module buffers -> static host values (source geometry).
    """
    x = np.atleast_1d(np.asarray(x, dtype=np.int64))
    y = np.atleast_1d(np.asarray(y, dtype=np.int64))
    dim = int(dim)
    assert x.shape == y.shape and x.ndim == 1 and x.size >= 1
    C, H, W = B.shape
    assert B_ext_0.shape == B.shape
    assert 0 <= dim < C
    assert np.all((x >= 0) & (x < H)) and np.all((y >= 0) & (y < W))

    min_sub = _min_sublane(B.dtype)
    # Smallest legal tile by default: traffic, not compute, is the cost here.
    TH = (min_sub if H >= min_sub else H) if row_block is None else int(row_block)
    TW = (_LANE if W >= _LANE else W) if col_block is None else int(col_block)
    assert TH == H or TH % min_sub == 0, "row_block must be a multiple of the min sublane tile"
    assert TW == W or TW % _LANE == 0, "col_block must be a multiple of 128 lanes"

    # VMEM guard (double-buffered B/B_ext_0/out blocks + f32 mask block).
    itemsize = jnp.dtype(B.dtype).itemsize
    footprint = 2 * TH * TW * (3 * itemsize + 4)
    assert footprint <= 16 * 1024 * 1024, (
        f"tile footprint {footprint} B too large; shrink row_block/col_block")

    # Unique (row_block, col_block) tiles touched by the source points.
    tr = x // TH
    tc = y // TW
    pairs = np.unique(np.stack([tr, tc], axis=1), axis=0)
    ntiles = int(pairs.shape[0])
    tile_r = np.ascontiguousarray(pairs[:, 0].astype(np.int32))
    tile_c = np.ascontiguousarray(pairs[:, 1].astype(np.int32))
    tile_index = {(int(r), int(c)): i for i, (r, c) in enumerate(pairs)}

    # Host-precomputed per-tile mask: O(1) VPU work per tile in the kernel.
    mask = np.zeros((ntiles, TH, TW), dtype=np.float32)
    for xi, yi, ri, ci in zip(x, y, tr, tc):
        t = tile_index[(int(ri), int(ci))]
        mask[t, int(xi - ri * TH), int(yi - ci * TW)] = 1.0

    bt_arr = jnp.asarray(Bt, dtype=jnp.float32).reshape((1,))

    def field_map(i, tr_ref, tc_ref):          # prefetch refs passed positionally
        return (dim, tr_ref[i], tc_ref[i])

    def mask_map(i, tr_ref, tc_ref):
        return (i, 0, 0)

    field_spec = pl.BlockSpec((pl.Squeezed(), TH, TW), field_map)
    mask_spec = pl.BlockSpec((pl.Squeezed(), TH, TW), mask_map)

    grid_spec = pltpu.PrefetchScalarGridSpec(
        num_scalar_prefetch=2,
        grid=(ntiles,),
        in_specs=[
            mask_spec,                                           # per-tile mask
            field_spec,                                          # B (aliased)
            field_spec,                                          # B_ext_0
            pl.BlockSpec(memory_space=pltpu.MemorySpace.SMEM),   # Bt scalar
        ],
        out_specs=field_spec,
    )

    cost = pl.CostEstimate(
        flops=2 * ntiles * TH * TW,
        transcendentals=0,
        bytes_accessed=int(ntiles * TH * TW * (3 * itemsize + 4)),
    )

    return pl.pallas_call(
        _wave_source_kernel,
        out_shape=jax.ShapeDtypeStruct(B.shape, B.dtype),
        grid_spec=grid_spec,
        # Flat inputs (incl. scalar prefetch): (tile_r, tile_c, mask, B, B_ext_0, Bt)
        # -> alias B (index 3) to output 0.  Unvisited blocks pass through.
        input_output_aliases={3: 0},
        cost_estimate=cost,
        compiler_params=pltpu.CompilerParams(
            dimension_semantics=("parallel",)),
    )(jnp.asarray(tile_r), jnp.asarray(tile_c), jnp.asarray(mask),
      B, B_ext_0, bt_arr)


if __name__ == "__main__":
    key = jax.random.PRNGKey(0)
    k1, k2 = jax.random.split(key)

    # Small field: 3 components (B-field xyz), 32 x 256 spatial grid.
    C, H, W = 3, 32, 256
    B = jax.random.normal(k1, (C, H, W), dtype=jnp.float32)
    B_ext_0 = jax.random.normal(k2, (C, H, W), dtype=jnp.float32)
    Bt = 0.37

    # Line source (WaveLineSource-style): rows 4..19 at column 5, plus one
    # extra point at (10, 200) to exercise column blocking.  Drives dim=0 and
    # spans 4 distinct (8, 128) tiles -> multi-tile grid.
    x = np.concatenate([np.arange(4, 20, dtype=np.int64),
                        np.array([10], dtype=np.int64)])
    y = np.concatenate([np.full((16,), 5, dtype=np.int64),
                        np.array([200], dtype=np.int64)])
    dim = 0

    # Pure-JAX reference (mirrors the PyTorch scatter semantics).
    ref = B.at[dim, x, y].set(B_ext_0[dim, x, y] + jnp.float32(Bt))

    # Donate B so the alias does not trigger a defensive full-array copy.
    fwd = jax.jit(
        functools.partial(wave_source_forward, x=x, y=y, dim=dim),
        donate_argnums=(0,),
    )
    out = jax.block_until_ready(fwd(B, B_ext_0, jnp.float32(Bt)))

    assert out.shape == ref.shape and out.dtype == ref.dtype
    # Exact equality: covers both the driven points and (crucially) the
    # untouched channels / tiles, guarding the input_output_aliases indexing.
    assert bool(jnp.all(out == ref)), "mismatch vs reference"

    print("KERNEL_OK")
</pallas_src>

<mosaic_0001>
module attributes {stable_mosaic.version = 11 : i64} {
  func.func @_wave_source_kernel(%arg0: i32, %arg1: memref<4xi32, #tpu.memory_space<smem>>, %arg2: memref<4xi32, #tpu.memory_space<smem>>, %arg3: memref<1x8x128xf32, #tpu.memory_space<vmem>>, %arg4: memref<1x8x128xf32, #tpu.memory_space<vmem>>, %arg5: memref<1x8x128xf32, #tpu.memory_space<vmem>>, %arg6: memref<1xf32, #tpu.memory_space<smem>>, %arg7: memref<1x8x128xf32, #tpu.memory_space<vmem>>) attributes {dimension_semantics = [#tpu.dimension_semantics<parallel>], iteration_bounds = array<i64: 4>, scalar_prefetch = 2 : i64, scratch_operands = 0 : i64, tpu.core_type = #tpu.core_type<tc>, window_params = [{transform_indices = @transform_0, window_bounds = array<i64: 1, 8, 128>}, {transform_indices = @transform_1, window_bounds = array<i64: 1, 8, 128>}, {transform_indices = @transform_2, window_bounds = array<i64: 1, 8, 128>}, {transform_indices = @transform_3, window_bounds = array<i64: 1>}, {transform_indices = @transform_4, window_bounds = array<i64: 1, 8, 128>}]} {
    %c0 = arith.constant 0 : index
    %c0_0 = arith.constant 0 : index
    %c0_1 = arith.constant 0 : index
    %0 = vector.load %arg5[%c0, %c0_0, %c0_1] : memref<1x8x128xf32, #tpu.memory_space<vmem>>, vector<1x8x128xf32>
    %1 = vector.shape_cast %0 : vector<1x8x128xf32> to vector<8x128xf32>
    %c0_2 = arith.constant 0 : index
    %2 = memref.load %arg6[%c0_2] : memref<1xf32, #tpu.memory_space<smem>>
    %3 = vector.broadcast %2 : f32 to vector<8x128xf32>
    %4 = arith.addf %1, %3 : vector<8x128xf32>
    %c0_3 = arith.constant 0 : index
    %c0_4 = arith.constant 0 : index
    %c0_5 = arith.constant 0 : index
    %5 = vector.load %arg3[%c0_3, %c0_4, %c0_5] : memref<1x8x128xf32, #tpu.memory_space<vmem>>, vector<1x8x128xf32>
    %6 = vector.shape_cast %5 : vector<1x8x128xf32> to vector<8x128xf32>
    %cst = arith.constant 0.000000e+00 : f32
    %7 = vector.broadcast %cst : f32 to vector<8x128xf32>
    %8 = arith.cmpf one, %6, %7 : vector<8x128xf32>
    %c0_6 = arith.constant 0 : index
    %c0_7 = arith.constant 0 : index
    %c0_8 = arith.constant 0 : index
    %9 = vector.load %arg4[%c0_6, %c0_7, %c0_8] : memref<1x8x128xf32, #tpu.memory_space<vmem>>, vector<1x8x128xf32>
    %10 = vector.shape_cast %9 : vector<1x8x128xf32> to vector<8x128xf32>
    %11 = arith.select %8, %4, %10 : vector<8x128xi1>, vector<8x128xf32>
    %c0_9 = arith.constant 0 : index
    %c0_10 = arith.constant 0 : index
    %c0_11 = arith.constant 0 : index
    %12 = vector.load %arg7[%c0_9, %c0_10, %c0_11] : memref<1x8x128xf32, #tpu.memory_space<vmem>>, vector<1x8x128xf32>
    %13 = vector.shape_cast %12 : vector<1x8x128xf32> to vector<8x128xf32>
    %14 = vector.shape_cast %11 : vector<8x128xf32> to vector<1x8x128xf32>
    tpu.vector_store %arg7[%c0_9, %c0_10, %c0_11], %14 {strides = array<i32>} : memref<1x8x128xf32, #tpu.memory_space<vmem>>, vector<1x8x128xf32>,
    return
  }
  func.func @transform_0(%arg0: i32, %arg1: memref<4xi32, #tpu.memory_space<smem>>, %arg2: memref<4xi32, #tpu.memory_space<smem>>) -> (i32, i32, i32) {
    %c0_i32 = arith.constant 0 : i32
    %c0_i32_0 = arith.constant 0 : i32
    %c0_i32_1 = arith.constant 0 : i32
    return %arg0, %c0_i32, %c0_i32_0 : i32, i32, i32
  }
  func.func @transform_1(%arg0: i32, %arg1: memref<4xi32, #tpu.memory_space<smem>>, %arg2: memref<4xi32, #tpu.memory_space<smem>>) -> (i32, i32, i32) {
    %0 = arith.index_cast %arg0 : i32 to index
    %1 = memref.load %arg1[%0] : memref<4xi32, #tpu.memory_space<smem>>
    %2 = arith.index_cast %arg0 : i32 to index
    %3 = memref.load %arg2[%2] : memref<4xi32, #tpu.memory_space<smem>>
    %c0_i32 = arith.constant 0 : i32
    %c0_i32_0 = arith.constant 0 : i32
    return %c0_i32, %1, %3 : i32, i32, i32
  }
  func.func @transform_2(%arg0: i32, %arg1: memref<4xi32, #tpu.memory_space<smem>>, %arg2: memref<4xi32, #tpu.memory_space<smem>>) -> (i32, i32, i32) {
    %0 = arith.index_cast %arg0 : i32 to index
    %1 = memref.load %arg1[%0] : memref<4xi32, #tpu.memory_space<smem>>
    %2 = arith.index_cast %arg0 : i32 to index
    %3 = memref.load %arg2[%2] : memref<4xi32, #tpu.memory_space<smem>>
    %c0_i32 = arith.constant 0 : i32
    %c0_i32_0 = arith.constant 0 : i32
    return %c0_i32, %1, %3 : i32, i32, i32
  }
  func.func @transform_3(%arg0: i32, %arg1: memref<4xi32, #tpu.memory_space<smem>>, %arg2: memref<4xi32, #tpu.memory_space<smem>>) -> i32 {
    %c0_i32 = arith.constant 0 : i32
    %c0_i32_0 = arith.constant 0 : i32
    return %c0_i32 : i32
  }
  func.func @transform_4(%arg0: i32, %arg1: memref<4xi32, #tpu.memory_space<smem>>, %arg2: memref<4xi32, #tpu.memory_space<smem>>) -> (i32, i32, i32) {
    %0 = arith.index_cast %arg0 : i32 to index
    %1 = memref.load %arg1[%0] : memref<4xi32, #tpu.memory_space<smem>>
    %2 = arith.index_cast %arg0 : i32 to index
    %3 = memref.load %arg2[%2] : memref<4xi32, #tpu.memory_space<smem>>
    %c0_i32 = arith.constant 0 : i32
    %c0_i32_0 = arith.constant 0 : i32
    return %c0_i32, %1, %3 : i32, i32, i32
  }
}

</mosaic_0001>

<bundles_post_ra>
// kernel: wave_source_forward.1
= control target key start
LH: loop header
LB: loop body
LE: loop exit
PB: predicated region body
PF: predicated region fallthrough
CT: control target
= control target key end

     0   :  { %s921_s27 = smov [#allocation3]   ;;  %s922_s28 = smov [#allocation4]   ;;  %s1334_s0 = inlined_call_operand.vmem [shape: s32[4], index: 0, kind: input, shape index: {}]   ;;  %s1335_s2 = inlined_call_operand.hbm [shape: f32[4,8,128], index: 2, kind: input, shape index: {}]   ;;  %s1336_s3 = inlined_call_operand.hbm [shape: f32[3,32,256], index: 3, kind: input, shape index: {}, may-alias: {3,6}]   ;;  %s1337_s4 = inlined_call_operand.hbm [shape: f32[3,32,256], index: 4, kind: input, shape index: {}]   ;;  %s1338_s6 = inlined_call_operand.hbm [shape: f32[3,32,256], index: 6, kind: output, shape index: {}, may-alias: {3,6}]   ;;  %s1339_s1 = inlined_call_operand.vmem [shape: s32[4], index: 1, kind: input, shape index: {}]   ;;  %s1340_s5 = inlined_call_operand.<no memory space> [shape: f32[1], index: 5, kind: input, shape index: {}]  }
   0x1   :  { %1356 = sst [smem:[#allocation41_spill]] %s1335_s2  ;;  %s12_s23 = sshll.u32 %s1334_s0, 4  ;;  %s13_s23 = int_to_ptr.vmem [resolvable:$true] %s12_s23 }
   0x2   :  { %1357 = sst [smem:[#allocation42_spill]] %s1336_s3  ;;  %s17_s26 = sshll.u32 %s1339_s1, 4  ;;  %s18_s26 = int_to_ptr.vmem [resolvable:$true] %s17_s26 }
   0x3   :  { %1358 = sst [smem:[#allocation43_spill]] %s1337_s4 }
   0x4   :  { %1359 = sst [smem:[#allocation44_spill]] %s1338_s6 }
   0x5   :  { %15 = dma.vmem_to_smem %s13_s23, 16, %s921_s27, [#allocation2] }
   0x6   :  { %20 = dma.vmem_to_smem %s18_s26, 16, %s922_s28, [#allocation2] }
   0x7   :  { %21 = sst [smem:[#allocation5]] %s1340_s5 }
   0x8   :  { %851 = dma.done.wait [#allocation2], 32 }
   0x9   :  { %852 = vsyncadd [#allocation2], 4294967264 }
   0xa   :  { %24 = sfence }
   0xb   :  { %25 = vsyncpa [#allocation7], 0 }
   0xc   :  { %27 = vsyncpa [#allocation7 + $0x1], 0 }
   0xd   :  { %28 = vsyncpa [#allocation10], 0 }
   0xe   :  { %30 = vsyncpa [#allocation10 + $0x1], 0 }
   0xf   :  { %31 = vsyncpa [#allocation8], 0 }
  0x10   :  { %33 = vsyncpa [#allocation8 + $0x1], 0  ;;  %s967_s0 = smov 0   ;;  %s969_s1 = smov 0  }
  0x11   :  { %s971_s7 = smov 0   ;;  %s973_s8 = smov 0  }
  0x12   :  { %s975_s9 = smov 0   ;;  %s977_s5 = smov 0  }
  0x13   :  { %s979_s10 = smov 0   ;;  %s981_s11 = smov 0  }
  0x14   :  { %s983_s12 = smov 0   ;;  %s985_s13 = smov 0  }
  0x15   :  { %s987_s14 = smov 0   ;;  %s989_s15 = smov 0  }
  0x16   :  { %s991_s16 = smov 0  }
  0x17 LB: > { %1360 = sst [smem:[#allocation28_spill]] %s871_s0  ;;  %s1031_s17 = sadd.s32 4294967295, %s919_s16   ;;  %s919_s16 = sphi %s991_s16, %s1405_s16   ;;  %s915_s15 = sphi %s989_s15, %s1414_s15   ;;  %s911_s14 = sphi %s987_s14, %s1421_s14   ;;  %s907_s13 = sphi %s985_s13, %s1420_s13   ;;  %s903_s12 = sphi %s983_s12, %s1412_s12   ;;  %s899_s11 = sphi %s981_s11, %s1411_s11   ;;  %s895_s10 = sphi %s979_s10, %s1410_s10   ;;  %s891_s5 = sphi %s977_s5, %s1409_s5   ;;  %s887_s9 = sphi %s975_s9, %s1419_s9   ;;  %s883_s8 = sphi %s973_s8, %s1418_s8   ;;  %s879_s7 = sphi %s971_s7, %s1407_s7   ;;  %s875_s1 = sphi %s969_s1, %s1417_s1   ;;  %s871_s0 = sphi %s967_s0, %s1416_s0  }
  0x18   : > { %1361 = sst [smem:[#allocation29_spill]] %s879_s7  ;;  %s486_s18 = sadd.s32 4294967294, %s919_s16  }
  0x19   : > { %1362 = sst [smem:[#allocation30_spill]] %s883_s8  ;;  %s1035_s19 = sadd.s32 1, %s919_s16  }
  0x1a   : > { %1363 = sst [smem:[#allocation31_spill]] %s891_s5  ;;  %p1349_p0 = scmp.eq.s32.totalorder %s919_s16, 0 }
  0x1b   : > { %1364 = sst [smem:[#allocation32_spill]] %s899_s11  ;;  %p1348_p1 = scmp.eq.s32.totalorder %s1031_s17, 0 }
  0x1c   : > { %1365 = sst [smem:[#allocation33_spill]] %s903_s12  ;;  %s78_s22 = sadd.s32 1, %s903_s12 }
  0x1d   : > { %1366 = sst [smem:[#allocation34_spill]] %s915_s15  ;;  %p85_p2 = scmp.ne.s32.totalorder %s903_s12, %s899_s11 }
  0x1e   : > { %1367 = sst [smem:[#allocation35_spill]] %s1035_s19  ;;  %p91_p3 = scmp.ne.s32.totalorder %s899_s11, %s895_s10 }
  0x1f   : > { %s69_s20 = sld [smem:[#allocation3 + %s919_s16]]  ;;  %p1049_p4 = por %p85_p2, %p1349_p0 }
  0x20   : > { %s70_s21 = sld [smem:[#allocation4 + %s919_s16]]  ;;  %p1056_p5 = por %p91_p3, %p1348_p1 }
  0x21   : > { %s71_s23 = sld [smem:[#allocation3 + %s1035_s19]]  ;;  %s163_s30 = sadd.s32 1, %s879_s7 }
  0x22   : > { %s72_s24 = sld [smem:[#allocation4 + %s1035_s19]]  ;;  %p173_p6 = scmp.ne.s32.totalorder %s879_s7, %s875_s1 }
  0x23   : > { %s154_s26 = sld [smem:[#allocation3 + %s919_s16]]  ;;  %p174_p7 = scmp.eq.s32.totalorder %s1031_s17, 3 }
  0x24   : > { %s155_s28 = sld [smem:[#allocation4 + %s919_s16]]  ;;  %p179_p8 = scmp.ne.s32.totalorder %s875_s1, %s871_s0 }
  0x25   : > { %s156_s29 = sld [smem:[#allocation3 + %s1035_s19]]  ;;  %p1069_p9 = por %p174_p7, %p173_p6 }
  0x26   : > { %s157_s6 = sld [smem:[#allocation4 + %s1035_s19]]  ;;  %p180_p11 = scmp.eq.s32.totalorder %s486_s18, 3 }
  0x27   : > { %s73_s10 = ssub.s32 %s69_s20, %s71_s23  ;;  %p1347_p13 = scmp.lt.s32.totalorder %s919_s16, 4 }
  0x28   : > { %s74_s11 = ssub.s32 %s70_s21, %s72_s24  ;;  %p1076_p12 = por %p180_p11, %p179_p8 }
  0x29   : > { %s75_s4 = sor.u32 %s74_s11, %s73_s10  ;;  %p1090_p3 = pnand %p1347_p13, %p1049_p4 }
  0x2a   : > { %s1370_s8 = scalar_select %p1069_p9, 1, 0 }
  0x2b   : > { %p76_p10 = scmp.eq.s32.totalorder %s75_s4, 0  ;;  %s158_s20 = ssub.s32 %s154_s26, %s156_s29 }
  0x2c   : > { %s159_s21 = ssub.s32 %s155_s28, %s157_s6  ;;  %s224_s4 = sand.u32 1, %s903_s12  }
  0x2d   : > { %s1074_s23 = scalar_select %p76_p10, %s903_s12, %s78_s22  }
  0x2e   : > { %s1372_s24 = scalar_select %p1076_p12, 1, 0 }
  0x2f   : > { %1371 = sst [smem:[#allocation36_spill]] %s1074_s23  ;;  %s160_s11 = sor.u32 %s159_s21, %s158_s20 }
  0x30   : > { %p161_p2 = scmp.eq.s32.totalorder %s160_s11, 0  ;;  %s491_s18 = sshll.u32 %s224_s4, 3 }
  0x31   : > { %p497_p6 = scmp.ge.s32.totalorder %s919_s16, 1  ;;  %p266_p7 = scmp.lt.s32.totalorder %s919_s16, 5 }
  0x32   : > { %s1084_s0 = scalar_select %p161_p2, %s879_s7, %s163_s30  }
  0x33   : > { %s508_s6 = scalar_select %p1049_p4, [#allocation3], [#allocation13] }
  0x34   : > { %1373 = sst [smem:[#allocation37_spill]] %s1084_s0  ;;  %s226_s30 = scalar_lea.vmem [#allocation9], %s491_s18 }
  0x35   : > { %s509_s26 = scalar_select %p1049_p4, %s919_s16, 0 }
  0x36   : > { %s1423_s6 = smov (!%p1347_p13, %s508_s6), [#allocation19]  ;;  %s1106_s20 = sshll.u32 %s226_s30, 4 }
  0x37   : > { %s1425_s26 = smov (!%p1347_p13, %s509_s26), 0  ;;  %1375 = sst [smem:[#allocation38_spill]] %s1106_s20 }
  0x38   : > { %s510_s28 = scalar_select %p1049_p4, [#allocation4], [#allocation14] }
  0x39   : > { %s227_s29 = sld [smem:[%s1423_s6 + %s1425_s26]]  ;;  %p1114_p8 = pnand %p497_p6, %p266_p7 }
  0x3a   : > { %s1427_s28 = smov (!%p1347_p13, %s510_s28), [#allocation20]  ;;  %s43_s4 = ssub.s32 %s919_s16, %s1035_s19 }
  0x3b   : > { %s228_s21 = sld [smem:[%s1427_s28 + %s1425_s26]]  ;;  %s46_s6 = sadd.s32 1, %s915_s15 }
  0x3c   : > { %p1121_p4 = scmp.eq.s32.totalorder %s43_s4, 0  ;;  %p53_p10 = scmp.ne.s32.totalorder %s915_s15, %s911_s14 }
  0x3d   : > { %s1378_s3 = sld [smem:[#allocation42_spill]]  ;;  %p59_p11 = scmp.ne.s32.totalorder %s911_s14, %s907_s13 }
  0x3e   : > { %p1134_p2 = por %p1349_p0, %p53_p10  ;;  %p685_p13 = pneg %p1090_p3 }
  0x3f   : > { %s492_s11 = sshll.u32 %s227_s29, 1  ;;  %p1140_p6 = por %p1348_p1, %p59_p11 }
  0x41   : > { %s232_s18 = sadd.s32 %s492_s11, %s228_s21  ;;  %s1381_s21 = sand.u32 1, %s919_s16  }
  0x42   : > { %s493_s10 = sshll.u32 %s232_s18, 3  ;;  %s1146_s11 = scalar_lea.sflag [#allocation10], %s1381_s21 }
  0x43   : > { %s234_s28 = scalar_lea.hbm %s1378_s3, %s493_s10  ;;  %s688_s18 = scalar_lea.hbm %s1378_s3, 192 }
  0x44   : > { %s236_s23 = sshll.u32 %s234_s28, 4  ;;  %s237_s23 = int_to_ptr.hbm [resolvable:$true] %s236_s23 }
  0x45   : > { %s681_s4 = sshra.s32 %s237_s23, 4  ;;  %s682_s4 = int_to_ptr.hbm [resolvable:$true] %s681_s4 }
  0x46   : > { %s683_s20 = scalar_lea.hbm %s682_s4, 8  ;;  %p689_p11 = scmp.lt.s32.totalorder %s682_s4, %s1378_s3 }
  0x47   : > { %p684_p7 = scmp.ne.s32.totalorder %s682_s4, %s683_s20  ;;  %p690_p1 = scmp.lt.s32.totalorder %s688_s18, %s683_s20 }
  0x49   : > { %p686_p12 = pnand %p685_p13, %p684_p7  ;;  %p691_p0 = por %p690_p1, %p689_p11 }
  0x4b   : > { %p687_p10 = pneg %p686_p12 }
  0x4d   : > { %p692_p9 = pnand %p691_p0, %p687_p10 }
  0x4f   : > { %695 = shalt.err (!%p692_p9)
}
  0x50   : > { %s1382_s21 = sld [smem:[#allocation38_spill]]  ;;  %s203_s4 = sand.u32 1, %s915_s15  }
  0x51   : > { %s1164_s13 = scalar_select %p1121_p4, %s915_s15, %s46_s6  }
  0x52   : > { %s490_s20 = sshll.u32 %s919_s16, 3  ;;  %s489_s10 = sshll.u32 %s203_s4, 3 }
  0x53   : > { %1384 = sst [smem:[#allocation39_spill]] %s1164_s13  ;;  %s207_s3 = scalar_lea.vmem [#allocation6], %s489_s10 }
  0x54   : > { %s1385_s2 = sld [smem:[#allocation41_spill]]  ;;  %p1386_p0 = scmp.lt.s32.totalorder %s919_s16, 4 }
  0x56   : > { %s1383_s0 = int_to_ptr.vmem [resolvable:$true] %s1382_s21  ;;  %s215_s21 = sshll.u32 %s207_s3, 4  ;;  %s216_s21 = int_to_ptr.vmem [resolvable:$true] %s215_s21 }
  0x57   : > { %537 = dma.hbm_to_vmem [thread:$0]  (!%p1090_p3), %s237_s23, 128, %s1383_s0, %s1146_s11  }
  0x58   : > { %p1175_p1 = pnand %p1386_p0, %p1134_p2  ;;  %s204_s0 = scalar_lea.sflag [#allocation7], %s203_s4 }
  0x5a   : > { %s211_s22 = scalar_lea.hbm %s1385_s2, %s490_s20  ;;  %p715_p12 = pneg %p1175_p1 }
  0x5b   : > { %s213_s28 = sshll.u32 %s211_s22, 4  ;;  %s718_s20 = scalar_lea.hbm %s1385_s2, 32  ;;  %s214_s28 = int_to_ptr.hbm [resolvable:$true] %s213_s28 }
  0x5c   : > { %s711_s23 = sshra.s32 %s214_s28, 4  ;;  %s712_s23 = int_to_ptr.hbm [resolvable:$true] %s711_s23 }
  0x5d   : > { %s713_s6 = scalar_lea.hbm %s712_s23, 8  ;;  %p719_p4 = scmp.lt.s32.totalorder %s712_s23, %s1385_s2 }
  0x5e   : > { %p714_p9 = scmp.ne.s32.totalorder %s712_s23, %s713_s6  ;;  %p720_p2 = scmp.lt.s32.totalorder %s718_s20, %s713_s6 }
  0x60   : > { %p716_p13 = pnand %p715_p12, %p714_p9  ;;  %p721_p7 = por %p720_p2, %p719_p4 }
  0x62   : > { %p717_p3 = pneg %p716_p13 }
  0x64   : > { %p722_p10 = pnand %p721_p7, %p717_p3 }
  0x66   : > { %725 = shalt.err (!%p722_p10)
}
  0x67   : > { %s1388_s4 = sld [smem:[#allocation30_spill]]  ;;  %p117_p11 = scmp.ne.s32.totalorder %s891_s5, %s887_s9 }
  0x68   : > { %530 = dma.hbm_to_vmem [thread:$0]  (!%p1175_p1), %s214_s28, 128, %s216_s21, %s204_s0  }
  0x69   : > { %s101_s18 = sld [smem:[#allocation3 + %s919_s16]]  ;;  %p1389_p9 = scmp.eq.s32.totalorder %s919_s16, 0 }
  0x6a   : > { %s102_s26 = sld [smem:[#allocation4 + %s919_s16]]  ;;  %p1391_p13 = scmp.eq.s32.totalorder %s1031_s17, 0 }
  0x6b   : > { %s103_s7 = sld [smem:[#allocation3 + %s1035_s19]]  ;;  %p1199_p12 = por %p117_p11, %p1389_p9 }
  0x6c   : > { %s104_s22 = sld [smem:[#allocation4 + %s1035_s19]]  ;;  %p1393_p3 = scmp.lt.s32.totalorder %s919_s16, 4 }
  0x6d   : > { %p123_p0 = scmp.ne.s32.totalorder %s887_s9, %s1388_s4  ;;  %s110_s3 = sadd.s32 1, %s891_s5 }
  0x6e   : > { %p1213_p4 = pnand %p1393_p3, %p1199_p12  ;;  %s247_s12 = sand.u32 1, %s891_s5  }
  0x6f   : > { %p1205_p1 = por %p123_p0, %p1391_p13  ;;  %p1396_p7 = pmov %p1393_p3 }
  0x70   : > { %s513_s0 = scalar_select %p1199_p12, [#allocation3], [#allocation15] }
  0x71   : > { %s105_s6 = ssub.s32 %s101_s18, %s103_s7  ;;  %p1397_p10 = pmov %p1393_p3 }
  0x72   : > { %s106_s30 = ssub.s32 %s102_s26, %s104_s22  ;;  %s1429_s0 = smov (!%p1396_p7, %s513_s0), [#allocation21] }
  0x73   : > { %s107_s20 = sor.u32 %s106_s30, %s105_s6  ;;  %p1398_p11 = pmov %p1393_p3 }
  0x74   : > { %p108_p2 = scmp.eq.s32.totalorder %s107_s20, 0  ;;  %s494_s18 = sshll.u32 %s247_s12, 3 }
  0x75   : > { %s514_s10 = scalar_select %p1199_p12, %s919_s16, 0 }
  0x76   : > { %s1225_s4 = scalar_select %p108_p2, %s891_s5, %s110_s3  }
  0x77   : > { %s1431_s10 = smov (!%p1397_p10, %s514_s10), 0  ;;  %s249_s22 = scalar_lea.vmem [#allocation11], %s494_s18 }
  0x78   : > { %1395 = sst [smem:[#allocation40_spill]] %s1225_s4  ;;  %s261_s6 = sshll.u32 %s249_s22, 4  ;;  %s262_s6 = int_to_ptr.vmem [resolvable:$true] %s261_s6 }
  0x79   : > { %s515_s2 = scalar_select %p1199_p12, [#allocation4], [#allocation16] }
  0x7a   : > { %s250_s13 = sld [smem:[%s1429_s0 + %s1431_s10]]  ;;  %p745_p9 = pneg %p1213_p4 }
  0x7b   : > { %s1433_s2 = smov (!%p1398_p11, %s515_s2), [#allocation22]  ;;  %s1399_s4 = sld [smem:[#allocation43_spill]] }
  0x7c   : > { %s251_s26 = sld [smem:[%s1433_s2 + %s1431_s10]] }
  0x80   : > { %s495_s7 = sshll.u32 %s250_s13, 1 }
  0x81   : > { %s748_s12 = scalar_lea.hbm %s1399_s4, 192 }
  0x82   : > { %s255_s30 = sadd.s32 %s495_s7, %s251_s26 }
  0x83   : > { %s496_s20 = sshll.u32 %s255_s30, 3 }
  0x84   : > { %s257_s5 = scalar_lea.hbm %s1399_s4, %s496_s20 }
  0x85   : > { %s259_s19 = sshll.u32 %s257_s5, 4  ;;  %s260_s19 = int_to_ptr.hbm [resolvable:$true] %s259_s19 }
  0x86   : > { %s741_s23 = sshra.s32 %s260_s19, 4  ;;  %s742_s23 = int_to_ptr.hbm [resolvable:$true] %s741_s23 }
  0x87   : > { %s743_s0 = scalar_lea.hbm %s742_s23, 8  ;;  %p749_p3 = scmp.lt.s32.totalorder %s742_s23, %s1399_s4 }
  0x88   : > { %p744_p0 = scmp.ne.s32.totalorder %s742_s23, %s743_s0  ;;  %p750_p2 = scmp.lt.s32.totalorder %s748_s12, %s743_s0 }
  0x8a   : > { %p746_p12 = pnand %p745_p9, %p744_p0  ;;  %p751_p7 = por %p750_p2, %p749_p3 }
  0x8c   : > { %p747_p13 = pneg %p746_p12 }
  0x8e   : > { %p752_p10 = pnand %p751_p7, %p747_p13 }
  0x90   : > { %755 = shalt.err (!%p752_p10)
}
  0x91   : > { %544 = dma.hbm_to_vmem [thread:$0]  (!%p1213_p4), %s260_s19, 128, %s262_s6, %s1146_s11  }
  0x92   : > { %270 = sbr.rel (%p1114_p8) target bundleno = 195 (0xc3), region = 36  ;;  %s272_s5 = sand.u32 (!%p1114_p8), 1, %s911_s14  }
  0x93   : > { %s498_s15 = sshll.u32 (!%p1114_p8), %s272_s5, 3  ;;  %s273_s26 = scalar_lea.sflag (!%p1114_p8), [#allocation7], %s272_s5 }
  0x94   : > { %s276_s7 = scalar_lea.vmem (!%p1114_p8), [#allocation6], %s498_s15 }
  0x97   : > { %854 = dma.done.wait (%p1140_p6), %s273_s26, 128  }
  0x98   : > { %856 = vsyncadd (%p1140_p6), %s273_s26, 4294967168  ;;  %s1400_s22 = sld [smem:[#allocation32_spill]]  ;;  %s282_s21 = sand.u32 1, %s1031_s17  }
  0x99   : > { %s283_s11 = scalar_lea.sflag [#allocation10], %s282_s21 }
  0x9e   : > { %s284_s30 = sand.u32 1, %s1400_s22  }
  0x9f   : > { %s499_s19 = sshll.u32 %s284_s30, 3 }
  0xa0   : > { %s286_s25 = scalar_lea.vmem [#allocation9], %s499_s19 }
  0xa1   : > { %858 = dma.done.wait (%p1056_p5), %s283_s11, 128  }
  0xa2   : > { %860 = vsyncadd (%p1056_p5), %s283_s11, 4294967168  ;;  %s294_s6 = sand.u32 1, %s887_s9  }
  0xa3   : > { %s500_s20 = sshll.u32 %s294_s6, 3 }
  0xa4   : > { %s296_s3 = scalar_lea.vmem [#allocation11], %s500_s20 }
  0xa5   : > { %862 = dma.done.wait (%p1205_p1), %s283_s11, 128  }
  0xa6   : > { %864 = vsyncadd (%p1205_p1), %s283_s11, 4294967168  ;;  %s329_s29 = sand.u32 1, %s875_s1   ;;  %s339_s23 = sld [smem:[#allocation5]]  ;;  %v338_v0 = vld [vmem:[%s296_s3] sm:$0xff]  ;;  %v344_v3 = vld [vmem:[%s286_s25] sm:$0xff] }
  0xa7   : > { %s501_s0 = sshll.u32 %s329_s29, 3  ;;  %p1401_p8 = scmp.ne.s32.totalorder %s1370_s8, 0  ;;  %v342_v2 = vld [vmem:[%s276_s7] sm:$0xff] }
  0xa8   : > { %vm343_vm0 = vcmp.ne.f32.partialorder %v342_v2, 0.0  ;;  %s331_s12 = scalar_lea.vmem [#allocation12], %s501_s0  ;;  %s1402_s21 = sld [smem:[#allocation44_spill]] }
  0xa9   : > { %s521_s27 = scalar_select %p1401_p8, [#allocation3], [#allocation17] }
  0xaa   : > { %s1435_s17 = smov (!%p1401_p8, %s1031_s17), 0  ;;  %s364_s10 = sshll.u32 %s331_s12, 4  ;;  %s365_s10 = int_to_ptr.vmem [resolvable:$true] %s364_s10 }
  0xab   : > { %s523_s2 = scalar_select %p1401_p8, [#allocation4], [#allocation18] }
  0xac   : > { %v340_v1 = vstv %s339_s23  ;;  %s355_s28 = sld [smem:[%s521_s27 + %s1435_s17]]  ;;  %s348_s19 = scalar_lea.sflag [#allocation8], %s329_s29 }
  0xad   : > { %v341_v4 = vadd.f32 %v340_v1, %v338_v0  ;;  %s356_s13 = sld [smem:[%s523_s2 + %s1435_s17]] }
  0xae   : > { %s791_s20 = scalar_lea.hbm %s1402_s21, 192 }
  0xaf   : > { %v345_v5 = vsel %vm343_vm0, %v341_v4, %v344_v3 }
  0xb0   : > { %346 = vst [vmem:[%s331_s12] sm:$0xff] %v345_v5 }
  0xb2   : > { %s503_s18 = sshll.u32 %s355_s28, 1 }
  0xb3   : > { %s360_s5 = sadd.s32 %s503_s18, %s356_s13 }
  0xb4   : > { %s504_s15 = sshll.u32 %s360_s5, 3 }
  0xb5   : > { %s362_s7 = scalar_lea.hbm %s1402_s21, %s504_s15 }
  0xb6   : > { %s366_s30 = sshll.u32 %s362_s7, 4  ;;  %s367_s30 = int_to_ptr.hbm [resolvable:$true] %s366_s30 }
  0xb7   : > { %s785_s11 = sshra.s32 %s367_s30, 4  ;;  %s786_s11 = int_to_ptr.hbm [resolvable:$true] %s785_s11 }
  0xb8   : > { %s787_s25 = scalar_lea.hbm %s786_s11, 8  ;;  %p792_p4 = scmp.lt.s32.totalorder %s786_s11, %s1402_s21 }
  0xb9   : > { %p788_p5 = scmp.ne.s32.totalorder %s786_s11, %s787_s25  ;;  %p793_p11 = scmp.lt.s32.totalorder %s791_s20, %s787_s25 }
  0xbb   : > { %p789_p6 = pnand %p788_p5, %p1401_p8  ;;  %p794_p0 = por %p793_p11, %p792_p4 }
  0xbd   : > { %p790_p1 = pneg %p789_p6 }
  0xbf   : > { %p795_p9 = pnand %p794_p0, %p790_p1 }
  0xc1   : > { %798 = shalt.err (!%p795_p9)
}
  0xc2   : > { %525 = dma.vmem_to_hbm [thread:$0]  (%p1401_p8), %s365_s10, 128, %s367_s30, %s348_s19  }
  0xc3 PF: > { %s1403_s29 = sld [smem:[#allocation28_spill]]  ;;  %p550_p12 = scmp.ge.s32.totalorder %s919_s16, 2 }
  0xc4   : > { %p1404_p13 = scmp.ne.s32.totalorder %s1372_s24, 0 }
  0xc6   : > { %p546_p3 = pnand %p550_p12, %p1404_p13 }
  0xc8   : > { %p547_p2 = pneg %p546_p3 }
  0xc9   : > { %s378_s0 = sand.u32 1, %s1403_s29  }
  0xca   : > { %s379_s27 = scalar_lea.sflag [#allocation8], %s378_s0 }
  0xcb   : > { %866 = dma.done.wait (%p547_p2), %s379_s27, 128  }
  0xcc   : > { %868 = vsyncadd (%p547_p2), %s379_s27, 4294967168  ;;  %s1405_s16 = sld [smem:[#allocation35_spill]]  ;;  %s1416_s0 = smov %s875_s1 }
  0xcd   : > { %s1406_s2 = sld [smem:[#allocation29_spill]]  ;;  %s1418_s8 = smov %s887_s9 }
  0xce   : > { %s1407_s7 = sld [smem:[#allocation37_spill]]  ;;  %s1420_s13 = smov %s911_s14 }
  0xcf   : > { %s1408_s28 = sld [smem:[#allocation31_spill]] }
  0xd0   : > { %s1409_s5 = sld [smem:[#allocation40_spill]] }
  0xd1   : > { %s1410_s10 = sld [smem:[#allocation32_spill]] }
  0xd2   : > { %s1411_s11 = sld [smem:[#allocation33_spill]]  ;;  %p36_p7 = scmp.ge.s32.totalorder %s1405_s16, 6  }
  0xd3   : > { %s1412_s12 = sld [smem:[#allocation36_spill]]  ;;  %s1417_s1 = smov %s1406_s2 }
  0xd4   : > { %s1413_s18 = sld [smem:[#allocation34_spill]] }
  0xd5   : > { %s1414_s15 = sld [smem:[#allocation39_spill]]  ;;  %s1419_s9 = smov %s1408_s28 }
  0xd6   :  { %38 = sbr.rel (!%p36_p7) target bundleno = 23 (0x17), region = 105 }
  0xda   : > { %s1421_s14 = smov %s1413_s18 }
  0xdb   :  { %385 = vsyncpa [#allocation7], 1 }
  0xdc   :  { %387 = vsyncpa [#allocation7 + $0x1], 1 }
  0xdd   :  { %388 = vsyncpa [#allocation10], 1 }
  0xde   :  { %390 = vsyncpa [#allocation10 + $0x1], 1 }
  0xdf   :  { %391 = vsyncpa [#allocation8], 1 }
  0xe0   :  { %393 = vsyncpa [#allocation8 + $0x1], 1 }

</bundles_post_ra>
